<compile_context>
chip_gen: v7x
topology: tpu7x:2x2x1
jax: 0.10.0
libtpu: 0.0.40
codegen_flags: <defaults>
</compile_context>

<pallas_src>
import jax
import jax.numpy as jnp
import numpy as np
from jax.experimental import pallas as pl
from jax.experimental.pallas import tpu as pltpu


def _round_up(x, m):
    return ((x + m - 1) // m) * m


# ---------------------------------------------------------------------------
# Kernel
# ---------------------------------------------------------------------------
def decoder_kernel(xd_ref, semb_ref, temb_ref, p_ref, sc_ref,
                   out_ref, x1_ref, x2_ref):
    xd = xd_ref[...]       # (B, S, T)  original PyTorch layout, no transpose
    semb = semb_ref[...]   # (B, S, E)
    temb = temb_ref[...]   # (T, B, H)
    p = p_ref[...]         # (24, 128)  packed parameter slab (rows, see below)

    B, S, T = xd.shape
    E = semb.shape[2]
    H = temb.shape[2]

    b_sa = sc_ref[0]
    b_sw = sc_ref[1]
    b_ta = sc_ref[2]
    b_tw = sc_ref[3]
    c_out = sc_ref[4]      # b_fc * sum(w_ff) + b_ff  (fused output-head const)

    def row(i, w):         # (1, w) row view of the param slab (kept 2-D so the
        return p[i:i + 1, :w]   # sublane broadcast folds into the binary op)

    # ---- spatial attention ------------------------------------------------
    # x1[b,s] = Linear([spat_hidden(=0), spatial_emb[b,s]]) -> only the E part
    # of the weight matters.  softmax over a (B,1,1) singleton dim == 1, so the
    # weighted input is just the sum over s.
    x1 = jnp.sum(semb * row(16, E)[None], axis=2) + b_sa            # (B, S)
    swi = jnp.sum(semb, axis=1)                                     # (B, E)
    spat_ctx = jnp.maximum(
        jnp.sum(swi * row(17, E), axis=1, keepdims=True) + b_sw, 0.0)  # (B,1)

    # ---- single LSTM step from zero state with x = [ctx, 0, ..., 0] --------
    def lstm_h(ctx, base):
        wi, wg, wo = row(base, H), row(base + 1, H), row(base + 2, H)
        bi, bg, bo = row(base + 3, H), row(base + 4, H), row(base + 5, H)
        gi = jax.nn.sigmoid(ctx * wi + bi)
        gg = jnp.tanh(ctx * wg + bg)
        go = jax.nn.sigmoid(ctx * wo + bo)
        return go * jnp.tanh(gi * gg)                                # (B, H)

    spat_h = lstm_h(spat_ctx, 2)

    # ---- temporal attention -------------------------------------------------
    # x2[t,b] = Linear([temp_emb[t,b], temp_hidden(=0)]); softmax over dim=1 of
    # a (1,B,1) tensor == softmax across the batch (reference quirk).
    x2 = jnp.sum(temb * row(0, H)[None], axis=2) + b_ta             # (T, B)
    z = jnp.maximum(x2, 0.0)
    ez = jnp.exp(z - jnp.max(z, axis=1, keepdims=True))
    w2 = ez * pl.reciprocal(jnp.sum(ez, axis=1, keepdims=True), approx=True)
    twi = jnp.sum(w2[:, :, None] * temb, axis=0)                    # (B, H)
    temp_ctx = jnp.maximum(
        jnp.sum(twi * row(1, H), axis=1, keepdims=True) + b_tw, 0.0)

    temp_h = lstm_h(temp_ctx, 8)

    # ---- fused output head --------------------------------------------------
    # context[b,t,:] = (sum_s x[b,s,t]) * enc[b,:]  =>
    #   out[b] = sum_s r[b,s] * (enc_dot[b] + w_fc_x[s]) + C
    # with r[b,s] = sum_t x[b,s,t]*w_ff[t]  (single lane-reduce over xd).
    enc_dot = (jnp.sum(spat_h * row(14, H), axis=1, keepdims=True)
               + jnp.sum(temp_h * row(15, H), axis=1, keepdims=True))   # (B,1)
    r = jnp.sum(xd * row(19, T)[None], axis=2)                      # (B, S)
    out = jnp.sum(r * (enc_dot + row(18, S)), axis=1, keepdims=True) + c_out

    # ---- exact-size outputs (writeback == real data, no zero padding) ------
    out_ref[...] = out                                              # (B, 1)
    x1_ref[...] = x1                                                # (B, S)
    x2_ref[...] = x2                                                # (T, B)


# ---------------------------------------------------------------------------
# Wrapper (single pallas_call, all under one jit)
# ---------------------------------------------------------------------------
def _decoder_forward_impl(prep, input_data, spatial_emb, temp_emb):
    B, S, T = input_data.shape
    H = temp_emb.shape[-1]

    # (T,1,B,H) -> (T,B,H): leading-dim squeeze, a free bitcast under this jit.
    temb = temp_emb.reshape(T, B, H).astype(jnp.float32)

    vmem = pl.BlockSpec(memory_space=pltpu.MemorySpace.VMEM)
    smem = pl.BlockSpec(memory_space=pltpu.MemorySpace.SMEM)

    out, x1, x2 = pl.pallas_call(
        decoder_kernel,
        out_shape=(jax.ShapeDtypeStruct((B, 1), jnp.float32),   # fc_final out
                   jax.ShapeDtypeStruct((B, S), jnp.float32),   # stacked x1_all
                   jax.ShapeDtypeStruct((T, B), jnp.float32)),  # stacked x2_all
        in_specs=[vmem, vmem, vmem, vmem, smem],
        out_specs=(vmem, vmem, vmem),
    )(input_data.astype(jnp.float32), spatial_emb.astype(jnp.float32), temb,
      prep['pslab'], prep['scal'])
    return out, x1, x2


decoder_forward = jax.jit(_decoder_forward_impl)


def prepare_params(params, H, E, S, T):
    """One-time (outside the hot path) repack of the module parameters into a
    single lane-padded (24,128) VMEM slab + one SMEM scalar table, so the
    kernel DMAs only 5 operands per call and never slices along sublanes of
    multiple tiny arrays.

    Slab rows:
      0  w_ta (temp-emb part)      1  w_tw
      2-4  spatial LSTM W_ih[:,0] (i,g,o)   5-7  spatial LSTM b_ih+b_hh (i,g,o)
      8-10 temporal LSTM W_ih[:,0] (i,g,o)  11-13 temporal LSTM b_ih+b_hh (i,g,o)
      14 w_fc on spat_h   15 w_fc on temp_h
      16 w_sa (spatial-emb part)   17 w_sw
      18 w_fc on raw input (S)     19 w_ff (T)
    Scalars: [b_sa, b_sw, b_ta, b_tw, C = b_fc*sum(w_ff)+b_ff, 0, 0, 0]."""
    O = params['w_ff'].shape[0]
    assert O == 1, "kernel specializes out_feats=1 (module default)"

    def col0_gates(w_ih):                 # (4H, 2H+1) -> i, g, o rows of column 0
        c = w_ih[:, 0]
        return c[0:H], c[2 * H:3 * H], c[3 * H:4 * H]

    def bias_gates(b_ih, b_hh):           # -> i, g, o slices of (b_ih + b_hh)
        b = jnp.reshape(b_ih, (-1,)) + jnp.reshape(b_hh, (-1,))
        return b[0:H], b[2 * H:3 * H], b[3 * H:4 * H]

    ws_i, ws_g, ws_o = col0_gates(params['wih_s'])
    bs_i, bs_g, bs_o = bias_gates(params['bih_s'], params['bhh_s'])
    wt_i, wt_g, wt_o = col0_gates(params['wih_t'])
    bt_i, bt_g, bt_o = bias_gates(params['bih_t'], params['bhh_t'])
    w_fc = jnp.reshape(params['w_fc'], (-1,))              # (2H + S,)
    w_ff = jnp.reshape(params['w_ff'], (-1,))              # (T,)

    P = 128
    assert max(H, E, S, T) <= P, "param slab assumes H, E, S, T <= 128"

    def pad(v):
        v = jnp.reshape(v, (-1,)).astype(jnp.float32)
        return jnp.pad(v, (0, P - v.shape[0]))

    rows = [
        params['w_ta'][0, :H],            # 0
        params['w_tw'][0],                # 1
        ws_i, ws_g, ws_o,                 # 2-4
        bs_i, bs_g, bs_o,                 # 5-7
        wt_i, wt_g, wt_o,                 # 8-10
        bt_i, bt_g, bt_o,                 # 11-13
        w_fc[0:H], w_fc[H:2 * H],         # 14, 15
        params['w_sa'][0, H:],            # 16
        params['w_sw'][0],                # 17
        w_fc[2 * H:2 * H + S],            # 18
        w_ff,                             # 19
    ]
    nrows = _round_up(len(rows), 8)
    pslab = jnp.stack([pad(r) for r in rows]
                      + [jnp.zeros((P,), jnp.float32)] * (nrows - len(rows)))

    c_out = (params['b_fc'].reshape(()) * jnp.sum(w_ff)
             + params['b_ff'].reshape(()))
    scal = jnp.stack([
        params['b_sa'].reshape(()), params['b_sw'].reshape(()),
        params['b_ta'].reshape(()), params['b_tw'].reshape(()),
        c_out, jnp.zeros(()), jnp.zeros(()), jnp.zeros(()),
    ]).astype(jnp.float32)                                  # (8,) -> SMEM
    return dict(pslab=pslab.astype(jnp.float32), scal=scal)


def as_reference_lists(out, x1, x2):
    """Host-side repack into the PyTorch return structure:
    (out (B,O), [x1 (B,1,1)] * S, [x2 (1,B,1)] * T). No device ops."""
    x1_np, x2_np = np.asarray(x1), np.asarray(x2)
    B, S = x1_np.shape
    T = x2_np.shape[0]
    x1_all = [x1_np[:, s].reshape(B, 1, 1) for s in range(S)]
    x2_all = [x2_np[t].reshape(1, B, 1) for t in range(T)]
    return out, x1_all, x2_all


# ---------------------------------------------------------------------------
# Direct (unsimplified) JAX port of the PyTorch forward — correctness oracle
# ---------------------------------------------------------------------------
def decoder_reference(params, input_data, spatial_emb, temp_emb):
    B, S, T = input_data.shape
    H = temp_emb.shape[-1]
    E = spatial_emb.shape[-1]
    f32 = jnp.float32
    hi = jax.lax.Precision.HIGHEST
    xT = jnp.transpose(input_data, (0, 2, 1)).astype(f32)    # (B, T, S)
    temb = temp_emb.reshape(T, B, H).astype(f32)
    zeros_h = jnp.zeros((B, H), f32)

    def lstm_step(x, h0, c0, w_ih, w_hh, b_ih, b_hh):
        gates = (jnp.dot(x, w_ih.T, precision=hi) + jnp.dot(h0, w_hh.T, precision=hi)
                 + b_ih.reshape(-1) + b_hh.reshape(-1))
        i = jax.nn.sigmoid(gates[:, 0 * H:1 * H])
        f = jax.nn.sigmoid(gates[:, 1 * H:2 * H])
        g = jnp.tanh(gates[:, 2 * H:3 * H])
        o = jax.nn.sigmoid(gates[:, 3 * H:4 * H])
        c1 = f * c0 + i * g
        return o * jnp.tanh(c1), c1

    x1_list, swi = [], jnp.zeros((B, E), f32)
    for s in range(S):
        cat = jnp.concatenate([zeros_h, spatial_emb[:, s]], axis=1)
        x1 = jnp.dot(cat, params['w_sa'].T, precision=hi) + params['b_sa'].reshape(-1)
        x1_list.append(x1)
        w = jax.nn.softmax(jnp.maximum(x1, 0.0)[:, None, :], axis=1)   # (B,1,1) ones
        swi = swi + w[:, 0, :] * spatial_emb[:, s]
    spat_ctx = jnp.maximum(jnp.dot(swi, params['w_sw'].T, precision=hi)
                           + params['b_sw'].reshape(-1), 0.0)
    xs = jnp.concatenate([spat_ctx, jnp.zeros((B, 2 * H), f32)], axis=1)
    spat_h, _ = lstm_step(xs, zeros_h, zeros_h, params['wih_s'], params['whh_s'],
                          params['bih_s'], params['bhh_s'])

    x2_list, twi = [], jnp.zeros((B, H), f32)
    for t in range(T):
        cat = jnp.concatenate([temb[t], zeros_h], axis=1)
        x2 = jnp.dot(cat, params['w_ta'].T, precision=hi) + params['b_ta'].reshape(-1)
        x2_list.append(x2)
        w = jax.nn.softmax(jnp.maximum(x2, 0.0).reshape(1, B, 1), axis=1)
        twi = twi + w.reshape(B, 1) * temb[t]
    temp_ctx = jnp.maximum(jnp.dot(twi, params['w_tw'].T, precision=hi)
                           + params['b_tw'].reshape(-1), 0.0)
    xt = jnp.concatenate([temp_ctx, jnp.zeros((B, 2 * H), f32)], axis=1)
    temp_h, _ = lstm_step(xt, zeros_h, zeros_h, params['wih_t'], params['whh_t'],
                          params['bih_t'], params['bhh_t'])

    enc = jnp.concatenate([spat_h, temp_h], axis=1)
    enc_rep = jnp.broadcast_to(enc[:, None, :], (B, S, 2 * H))
    context = jnp.einsum('bts,bsh->bth', xT, enc_rep, precision=hi)
    feats = jnp.concatenate([context, xT], axis=2)
    y = jnp.dot(feats, params['w_fc'].T, precision=hi) + params['b_fc'].reshape(-1)
    out = jnp.dot(y.reshape(B, T), params['w_ff'].T, precision=hi) + params['b_ff'].reshape(-1)
    x1_arr = jnp.concatenate(x1_list, axis=1)                 # (B, S)
    x2_arr = jnp.stack([v.reshape(-1) for v in x2_list], axis=0)  # (T, B)
    return out, x1_arr, x2_arr


def init_params(key, H, E, S, T, O=1):
    """Deterministic synthetic parameters matching the module's shapes."""
    def lin(k, out_f, in_f, scale=0.1):
        kw, kb = jax.random.split(k)
        return (scale * jax.random.normal(kw, (out_f, in_f), jnp.float32),
                scale * jax.random.normal(kb, (1, out_f), jnp.float32))

    ks = jax.random.split(key, 10)
    p = {}
    p['w_sa'], p['b_sa'] = lin(ks[0], 1, H + E)            # spatial_attn_linear
    p['w_sw'], p['b_sw'] = lin(ks[1], 1, E)                # spatial_attn_wrapper
    p['w_ta'], p['b_ta'] = lin(ks[2], 1, 2 * H)            # temporal_attn_linear
    p['w_tw'], p['b_tw'] = lin(ks[3], 1, H)                # temporal_attn_wrapper
    p['wih_s'], p['bih_s'] = lin(ks[4], 4 * H, 2 * H + 1)  # spatial LSTM
    p['whh_s'], p['bhh_s'] = lin(ks[5], 4 * H, H)
    p['wih_t'], p['bih_t'] = lin(ks[6], 4 * H, 2 * H + 1)  # temporal LSTM
    p['whh_t'], p['bhh_t'] = lin(ks[7], 4 * H, H)
    p['w_fc'], p['b_fc'] = lin(ks[8], O, 2 * H + S)        # fc
    p['w_ff'], p['b_ff'] = lin(ks[9], O, T * O, scale=1.0) # fc_final (weight.normal_())
    return p


if __name__ == "__main__":
    B, S, T, H, E, O = 2, 4, 8, 16, 20, 1   # batch, input_size, time_length,
                                            # encoder_hidden, spatial_emb_size
    key = jax.random.PRNGKey(0)
    k1, k2, k3, kp = jax.random.split(key, 4)
    input_data = jax.random.normal(k1, (B, S, T), jnp.float32)
    spatial_emb = jax.random.normal(k2, (B, S, E), jnp.float32)
    temp_emb = jax.random.normal(k3, (T, 1, B, H), jnp.float32)
    params = init_params(kp, H, E, S, T, O)
    prep = prepare_params(params, H, E, S, T)   # one-time parameter repack

    out, x1, x2 = decoder_forward(prep, input_data, spatial_emb, temp_emb)
    jax.block_until_ready(out)
    assert out.shape == (B, O) and x1.shape == (B, S) and x2.shape == (T, B)

    # correctness vs. the direct (unsimplified) port of the PyTorch forward
    ref_out, ref_x1, ref_x2 = decoder_reference(params, input_data, spatial_emb, temp_emb)
    np.testing.assert_allclose(np.asarray(out), np.asarray(ref_out), rtol=1e-3, atol=1e-4)
    np.testing.assert_allclose(np.asarray(x1), np.asarray(ref_x1), rtol=1e-3, atol=1e-4)
    np.testing.assert_allclose(np.asarray(x2), np.asarray(ref_x2), rtol=1e-3, atol=1e-4)

    # optional: PyTorch-shaped return structure, built host-side only.
    _, x1_all, x2_all = as_reference_lists(out, x1, x2)
    assert len(x1_all) == S and x1_all[0].shape == (B, 1, 1)
    assert len(x2_all) == T and x2_all[0].shape == (1, B, 1)

    print("KERNEL_OK")
</pallas_src>

<mosaic_0001>
module attributes {stable_mosaic.version = 11 : i64} {
  func.func @decoder_kernel(%arg0: memref<2x4x8xf32, #tpu.memory_space<vmem>>, %arg1: memref<2x4x20xf32, #tpu.memory_space<vmem>>, %arg2: memref<8x2x16xf32, #tpu.memory_space<vmem>>, %arg3: memref<24x128xf32, #tpu.memory_space<vmem>>, %arg4: memref<8xf32, #tpu.memory_space<smem>>, %arg5: memref<2x1xf32, #tpu.memory_space<vmem>>, %arg6: memref<2x4xf32, #tpu.memory_space<vmem>>, %arg7: memref<8x2xf32, #tpu.memory_space<vmem>>) attributes {dimension_semantics = [], scalar_prefetch = 0 : i64, scratch_operands = 0 : i64, tpu.core_type = #tpu.core_type<tc>} {
    %c0 = arith.constant 0 : index
    %c0_0 = arith.constant 0 : index
    %c0_1 = arith.constant 0 : index
    %0 = vector.load %arg0[%c0, %c0_0, %c0_1] : memref<2x4x8xf32, #tpu.memory_space<vmem>>, vector<2x4x8xf32>
    %c0_2 = arith.constant 0 : index
    %c0_3 = arith.constant 0 : index
    %c0_4 = arith.constant 0 : index
    %1 = vector.load %arg1[%c0_2, %c0_3, %c0_4] : memref<2x4x20xf32, #tpu.memory_space<vmem>>, vector<2x4x20xf32>
    %c0_5 = arith.constant 0 : index
    %c0_6 = arith.constant 0 : index
    %c0_7 = arith.constant 0 : index
    %2 = vector.load %arg2[%c0_5, %c0_6, %c0_7] : memref<8x2x16xf32, #tpu.memory_space<vmem>>, vector<8x2x16xf32>
    %c0_8 = arith.constant 0 : index
    %c0_9 = arith.constant 0 : index
    %3 = vector.load %arg3[%c0_8, %c0_9] : memref<24x128xf32, #tpu.memory_space<vmem>>, vector<24x128xf32>
    %c0_10 = arith.constant 0 : index
    %4 = memref.load %arg4[%c0_10] : memref<8xf32, #tpu.memory_space<smem>>
    %c1 = arith.constant 1 : index
    %5 = memref.load %arg4[%c1] : memref<8xf32, #tpu.memory_space<smem>>
    %c2 = arith.constant 2 : index
    %6 = memref.load %arg4[%c2] : memref<8xf32, #tpu.memory_space<smem>>
    %c3 = arith.constant 3 : index
    %7 = memref.load %arg4[%c3] : memref<8xf32, #tpu.memory_space<smem>>
    %c4 = arith.constant 4 : index
    %8 = memref.load %arg4[%c4] : memref<8xf32, #tpu.memory_space<smem>>
    %9 = vector.extract_strided_slice %3 {offsets = [16, 0], sizes = [1, 20], strides = [1, 1]} : vector<24x128xf32> to vector<1x20xf32>
    %10 = vector.shape_cast %9 : vector<1x20xf32> to vector<1x1x20xf32>
    %11 = vector.broadcast %10 : vector<1x1x20xf32> to vector<2x4x20xf32>
    %12 = arith.mulf %1, %11 : vector<2x4x20xf32>
    %cst = arith.constant dense<0.000000e+00> : vector<2x4xf32>
    %13 = vector.multi_reduction <add>, %12, %cst [2] : vector<2x4x20xf32> to vector<2x4xf32>
    %14 = vector.broadcast %4 : f32 to vector<2x4xf32>
    %15 = arith.addf %13, %14 : vector<2x4xf32>
    %cst_11 = arith.constant dense<0.000000e+00> : vector<2x20xf32>
    %16 = vector.multi_reduction <add>, %1, %cst_11 [1] : vector<2x4x20xf32> to vector<2x20xf32>
    %17 = vector.extract_strided_slice %3 {offsets = [17, 0], sizes = [1, 20], strides = [1, 1]} : vector<24x128xf32> to vector<1x20xf32>
    %18 = vector.broadcast %17 : vector<1x20xf32> to vector<2x20xf32>
    %19 = arith.mulf %16, %18 : vector<2x20xf32>
    %cst_12 = arith.constant dense<0.000000e+00> : vector<2xf32>
    %20 = vector.multi_reduction <add>, %19, %cst_12 [1] : vector<2x20xf32> to vector<2xf32>
    %21 = vector.shape_cast %20 : vector<2xf32> to vector<2x1xf32>
    %22 = vector.broadcast %5 : f32 to vector<2x1xf32>
    %23 = arith.addf %21, %22 : vector<2x1xf32>
    %cst_13 = arith.constant 0.000000e+00 : f32
    %24 = vector.broadcast %cst_13 : f32 to vector<2x1xf32>
    %25 = arith.maximumf %23, %24 : vector<2x1xf32>
    %26 = vector.extract_strided_slice %3 {offsets = [2, 0], sizes = [1, 16], strides = [1, 1]} : vector<24x128xf32> to vector<1x16xf32>
    %27 = vector.extract_strided_slice %3 {offsets = [3, 0], sizes = [1, 16], strides = [1, 1]} : vector<24x128xf32> to vector<1x16xf32>
    %28 = vector.extract_strided_slice %3 {offsets = [4, 0], sizes = [1, 16], strides = [1, 1]} : vector<24x128xf32> to vector<1x16xf32>
    %29 = vector.extract_strided_slice %3 {offsets = [5, 0], sizes = [1, 16], strides = [1, 1]} : vector<24x128xf32> to vector<1x16xf32>
    %30 = vector.extract_strided_slice %3 {offsets = [6, 0], sizes = [1, 16], strides = [1, 1]} : vector<24x128xf32> to vector<1x16xf32>
    %31 = vector.extract_strided_slice %3 {offsets = [7, 0], sizes = [1, 16], strides = [1, 1]} : vector<24x128xf32> to vector<1x16xf32>
    %32 = vector.broadcast %25 : vector<2x1xf32> to vector<2x16xf32>
    %33 = vector.broadcast %26 : vector<1x16xf32> to vector<2x16xf32>
    %34 = arith.mulf %32, %33 : vector<2x16xf32>
    %35 = vector.broadcast %29 : vector<1x16xf32> to vector<2x16xf32>
    %36 = arith.addf %34, %35 : vector<2x16xf32>
    %37 = arith.negf %36 : vector<2x16xf32>
    %38 = math.exp %37 : vector<2x16xf32>
    %cst_14 = arith.constant 1.000000e+00 : f32
    %39 = vector.broadcast %cst_14 : f32 to vector<2x16xf32>
    %40 = arith.addf %39, %38 : vector<2x16xf32>
    %41 = arith.divf %39, %40 : vector<2x16xf32>
    %42 = vector.broadcast %25 : vector<2x1xf32> to vector<2x16xf32>
    %43 = vector.broadcast %27 : vector<1x16xf32> to vector<2x16xf32>
    %44 = arith.mulf %42, %43 : vector<2x16xf32>
    %45 = vector.broadcast %30 : vector<1x16xf32> to vector<2x16xf32>
    %46 = arith.addf %44, %45 : vector<2x16xf32>
    %47 = math.tanh %46 : vector<2x16xf32>
    %48 = vector.broadcast %25 : vector<2x1xf32> to vector<2x16xf32>
    %49 = vector.broadcast %28 : vector<1x16xf32> to vector<2x16xf32>
    %50 = arith.mulf %48, %49 : vector<2x16xf32>
    %51 = vector.broadcast %31 : vector<1x16xf32> to vector<2x16xf32>
    %52 = arith.addf %50, %51 : vector<2x16xf32>
    %53 = arith.negf %52 : vector<2x16xf32>
    %54 = math.exp %53 : vector<2x16xf32>
    %cst_15 = arith.constant 1.000000e+00 : f32
    %55 = vector.broadcast %cst_15 : f32 to vector<2x16xf32>
    %56 = arith.addf %55, %54 : vector<2x16xf32>
    %57 = arith.divf %55, %56 : vector<2x16xf32>
    %58 = arith.mulf %41, %47 : vector<2x16xf32>
    %59 = math.tanh %58 : vector<2x16xf32>
    %60 = arith.mulf %57, %59 : vector<2x16xf32>
    %61 = vector.extract_strided_slice %3 {offsets = [0, 0], sizes = [1, 16], strides = [1, 1]} : vector<24x128xf32> to vector<1x16xf32>
    %62 = vector.shape_cast %61 : vector<1x16xf32> to vector<1x1x16xf32>
    %63 = vector.broadcast %62 : vector<1x1x16xf32> to vector<8x2x16xf32>
    %64 = arith.mulf %2, %63 : vector<8x2x16xf32>
    %cst_16 = arith.constant dense<0.000000e+00> : vector<8x2xf32>
    %65 = vector.multi_reduction <add>, %64, %cst_16 [2] : vector<8x2x16xf32> to vector<8x2xf32>
    %66 = vector.broadcast %6 : f32 to vector<8x2xf32>
    %67 = arith.addf %65, %66 : vector<8x2xf32>
    %cst_17 = arith.constant 0.000000e+00 : f32
    %68 = vector.broadcast %cst_17 : f32 to vector<8x2xf32>
    %69 = arith.maximumf %67, %68 : vector<8x2xf32>
    %cst_18 = arith.constant dense<0xFF800000> : vector<8xf32>
    %70 = vector.multi_reduction <maximumf>, %69, %cst_18 [1] : vector<8x2xf32> to vector<8xf32>
    %71 = vector.shape_cast %70 : vector<8xf32> to vector<8x1xf32>
    %72 = vector.broadcast %71 : vector<8x1xf32> to vector<8x2xf32>
    %73 = arith.subf %69, %72 : vector<8x2xf32>
    %74 = math.exp %73 : vector<8x2xf32>
    %cst_19 = arith.constant dense<0.000000e+00> : vector<8xf32>
    %75 = vector.multi_reduction <add>, %74, %cst_19 [1] : vector<8x2xf32> to vector<8xf32>
    %76 = vector.shape_cast %75 : vector<8xf32> to vector<8x1xf32>
    %77 = tpu.reciprocal %76 {approx = true} : vector<8x1xf32> -> vector<8x1xf32>
    %78 = vector.broadcast %77 : vector<8x1xf32> to vector<8x2xf32>
    %79 = arith.mulf %74, %78 : vector<8x2xf32>
    %80 = vector.shape_cast %79 : vector<8x2xf32> to vector<8x2x1xf32>
    %81 = vector.broadcast %80 : vector<8x2x1xf32> to vector<8x2x16xf32>
    %82 = arith.mulf %81, %2 : vector<8x2x16xf32>
    %cst_20 = arith.constant dense<0.000000e+00> : vector<2x16xf32>
    %83 = vector.multi_reduction <add>, %82, %cst_20 [0] : vector<8x2x16xf32> to vector<2x16xf32>
    %84 = vector.extract_strided_slice %3 {offsets = [1, 0], sizes = [1, 16], strides = [1, 1]} : vector<24x128xf32> to vector<1x16xf32>
    %85 = vector.broadcast %84 : vector<1x16xf32> to vector<2x16xf32>
    %86 = arith.mulf %83, %85 : vector<2x16xf32>
    %cst_21 = arith.constant dense<0.000000e+00> : vector<2xf32>
    %87 = vector.multi_reduction <add>, %86, %cst_21 [1] : vector<2x16xf32> to vector<2xf32>
    %88 = vector.shape_cast %87 : vector<2xf32> to vector<2x1xf32>
    %89 = vector.broadcast %7 : f32 to vector<2x1xf32>
    %90 = arith.addf %88, %89 : vector<2x1xf32>
    %cst_22 = arith.constant 0.000000e+00 : f32
    %91 = vector.broadcast %cst_22 : f32 to vector<2x1xf32>
    %92 = arith.maximumf %90, %91 : vector<2x1xf32>
    %93 = vector.extract_strided_slice %3 {offsets = [8, 0], sizes = [1, 16], strides = [1, 1]} : vector<24x128xf32> to vector<1x16xf32>
    %94 = vector.extract_strided_slice %3 {offsets = [9, 0], sizes = [1, 16], strides = [1, 1]} : vector<24x128xf32> to vector<1x16xf32>
    %95 = vector.extract_strided_slice %3 {offsets = [10, 0], sizes = [1, 16], strides = [1, 1]} : vector<24x128xf32> to vector<1x16xf32>
    %96 = vector.extract_strided_slice %3 {offsets = [11, 0], sizes = [1, 16], strides = [1, 1]} : vector<24x128xf32> to vector<1x16xf32>
    %97 = vector.extract_strided_slice %3 {offsets = [12, 0], sizes = [1, 16], strides = [1, 1]} : vector<24x128xf32> to vector<1x16xf32>
    %98 = vector.extract_strided_slice %3 {offsets = [13, 0], sizes = [1, 16], strides = [1, 1]} : vector<24x128xf32> to vector<1x16xf32>
    %99 = vector.broadcast %92 : vector<2x1xf32> to vector<2x16xf32>
    %100 = vector.broadcast %93 : vector<1x16xf32> to vector<2x16xf32>
    %101 = arith.mulf %99, %100 : vector<2x16xf32>
    %102 = vector.broadcast %96 : vector<1x16xf32> to vector<2x16xf32>
    %103 = arith.addf %101, %102 : vector<2x16xf32>
    %104 = arith.negf %103 : vector<2x16xf32>
    %105 = math.exp %104 : vector<2x16xf32>
    %cst_23 = arith.constant 1.000000e+00 : f32
    %106 = vector.broadcast %cst_23 : f32 to vector<2x16xf32>
    %107 = arith.addf %106, %105 : vector<2x16xf32>
    %108 = arith.divf %106, %107 : vector<2x16xf32>
    %109 = vector.broadcast %92 : vector<2x1xf32> to vector<2x16xf32>
    %110 = vector.broadcast %94 : vector<1x16xf32> to vector<2x16xf32>
    %111 = arith.mulf %109, %110 : vector<2x16xf32>
    %112 = vector.broadcast %97 : vector<1x16xf32> to vector<2x16xf32>
    %113 = arith.addf %111, %112 : vector<2x16xf32>
    %114 = math.tanh %113 : vector<2x16xf32>
    %115 = vector.broadcast %92 : vector<2x1xf32> to vector<2x16xf32>
    %116 = vector.broadcast %95 : vector<1x16xf32> to vector<2x16xf32>
    %117 = arith.mulf %115, %116 : vector<2x16xf32>
    %118 = vector.broadcast %98 : vector<1x16xf32> to vector<2x16xf32>
    %119 = arith.addf %117, %118 : vector<2x16xf32>
    %120 = arith.negf %119 : vector<2x16xf32>
    %121 = math.exp %120 : vector<2x16xf32>
    %cst_24 = arith.constant 1.000000e+00 : f32
    %122 = vector.broadcast %cst_24 : f32 to vector<2x16xf32>
    %123 = arith.addf %122, %121 : vector<2x16xf32>
    %124 = arith.divf %122, %123 : vector<2x16xf32>
    %125 = arith.mulf %108, %114 : vector<2x16xf32>
    %126 = math.tanh %125 : vector<2x16xf32>
    %127 = arith.mulf %124, %126 : vector<2x16xf32>
    %128 = vector.extract_strided_slice %3 {offsets = [14, 0], sizes = [1, 16], strides = [1, 1]} : vector<24x128xf32> to vector<1x16xf32>
    %129 = vector.broadcast %128 : vector<1x16xf32> to vector<2x16xf32>
    %130 = arith.mulf %60, %129 : vector<2x16xf32>
    %cst_25 = arith.constant dense<0.000000e+00> : vector<2xf32>
    %131 = vector.multi_reduction <add>, %130, %cst_25 [1] : vector<2x16xf32> to vector<2xf32>
    %132 = vector.shape_cast %131 : vector<2xf32> to vector<2x1xf32>
    %133 = vector.extract_strided_slice %3 {offsets = [15, 0], sizes = [1, 16], strides = [1, 1]} : vector<24x128xf32> to vector<1x16xf32>
    %134 = vector.broadcast %133 : vector<1x16xf32> to vector<2x16xf32>
    %135 = arith.mulf %127, %134 : vector<2x16xf32>
    %cst_26 = arith.constant dense<0.000000e+00> : vector<2xf32>
    %136 = vector.multi_reduction <add>, %135, %cst_26 [1] : vector<2x16xf32> to vector<2xf32>
    %137 = vector.shape_cast %136 : vector<2xf32> to vector<2x1xf32>
    %138 = arith.addf %132, %137 : vector<2x1xf32>
    %139 = vector.extract_strided_slice %3 {offsets = [19, 0], sizes = [1, 8], strides = [1, 1]} : vector<24x128xf32> to vector<1x8xf32>
    %140 = vector.shape_cast %139 : vector<1x8xf32> to vector<1x1x8xf32>
    %141 = vector.broadcast %140 : vector<1x1x8xf32> to vector<2x4x8xf32>
    %142 = arith.mulf %0, %141 : vector<2x4x8xf32>
    %cst_27 = arith.constant dense<0.000000e+00> : vector<2x4xf32>
    %143 = vector.multi_reduction <add>, %142, %cst_27 [2] : vector<2x4x8xf32> to vector<2x4xf32>
    %144 = vector.extract_strided_slice %3 {offsets = [18, 0], sizes = [1, 4], strides = [1, 1]} : vector<24x128xf32> to vector<1x4xf32>
    %145 = vector.broadcast %138 : vector<2x1xf32> to vector<2x4xf32>
    %146 = vector.broadcast %144 : vector<1x4xf32> to vector<2x4xf32>
    %147 = arith.addf %145, %146 : vector<2x4xf32>
    %148 = arith.mulf %143, %147 : vector<2x4xf32>
    %cst_28 = arith.constant dense<0.000000e+00> : vector<2xf32>
    %149 = vector.multi_reduction <add>, %148, %cst_28 [1] : vector<2x4xf32> to vector<2xf32>
    %150 = vector.shape_cast %149 : vector<2xf32> to vector<2x1xf32>
    %151 = vector.broadcast %8 : f32 to vector<2x1xf32>
    %152 = arith.addf %150, %151 : vector<2x1xf32>
    %c0_29 = arith.constant 0 : index
    %c0_30 = arith.constant 0 : index
    %153 = vector.load %arg5[%c0_29, %c0_30] : memref<2x1xf32, #tpu.memory_space<vmem>>, vector<2x1xf32>
    tpu.vector_store %arg5[%c0_29, %c0_30], %152 {strides = array<i32>} : memref<2x1xf32, #tpu.memory_space<vmem>>, vector<2x1xf32>,
    %c0_31 = arith.constant 0 : index
    %c0_32 = arith.constant 0 : index
    %154 = vector.load %arg6[%c0_31, %c0_32] : memref<2x4xf32, #tpu.memory_space<vmem>>, vector<2x4xf32>
    tpu.vector_store %arg6[%c0_31, %c0_32], %15 {strides = array<i32>} : memref<2x4xf32, #tpu.memory_space<vmem>>, vector<2x4xf32>,
    %c0_33 = arith.constant 0 : index
    %c0_34 = arith.constant 0 : index
    %155 = vector.load %arg7[%c0_33, %c0_34] : memref<8x2xf32, #tpu.memory_space<vmem>>, vector<8x2xf32>
    tpu.vector_store %arg7[%c0_33, %c0_34], %67 {strides = array<i32>} : memref<8x2xf32, #tpu.memory_space<vmem>>, vector<8x2xf32>,
    return
  }
}

</mosaic_0001>

<bundles_post_ra>
// kernel: _decoder_forward_impl.1
= control target key start
LH: loop header
LB: loop body
LE: loop exit
PB: predicated region body
PF: predicated region fallthrough
CT: control target
= control target key end

     0   :  { %13 = vsyncpa [#allocation3], 0  ;;  %s1351_s0 = inlined_call_operand.hbm [shape: f32[2,4,8], index: 0, kind: input, shape index: {}]   ;;  %s1352_s1 = inlined_call_operand.hbm [shape: f32[2,4,20], index: 1, kind: input, shape index: {}]   ;;  %s1353_s2 = inlined_call_operand.vmem [shape: f32[8,2,16], index: 2, kind: input, shape index: {}]   ;;  %s1354_s3 = inlined_call_operand.hbm [shape: f32[24,128], index: 3, kind: input, shape index: {}]   ;;  %s1355_s4 = inlined_call_operand.vmem [shape: f32[8], index: 4, kind: input, shape index: {}]   ;;  %s1356_s5 = inlined_call_operand.vmem [shape: f32[2,1], index: 5, kind: output, shape index: {0}]   ;;  %s1357_s6 = inlined_call_operand.hbm [shape: f32[2,4], index: 6, kind: output, shape index: {1}]   ;;  %s1358_s7 = inlined_call_operand.vmem [shape: f32[8,2], index: 7, kind: output, shape index: {2}]  }
   0x1   :  { %14 = vsyncpa [#allocation7], 0 }
   0x2   :  { %15 = vsyncpa [#allocation5], 0 }
   0x3   :  { %16 = vsyncpa [#allocation4], 0  ;;  %s954_s24 = smov [#allocation6]   ;;  %s955_s26 = smov [#allocation2]  }
   0x4   :  { %s34_s25 = sshll.u32 %s954_s24, 4  ;;  %s22_s27 = sshll.u32 %s955_s26, 4  ;;  %s35_s25 = int_to_ptr.vmem [resolvable:$true] %s34_s25  ;;  %s1004_s27 = int_to_ptr.vmem [resolvable:$true] %s22_s27 }
   0x5   :  { %s846_s30 = scalar_lea.hbm %s1352_s1, 128 }
   0x6   :  { %p847_p0 = scmp.ne.s32.totalorder %s1352_s1, %s846_s30  ;;  %p850_p1 = scmp.lt.u32.totalorder %s846_s30, %s1352_s1 }
   0x8   :  { %p852_p2 = pnand %p850_p1, %p847_p0 }
   0xa   :  { %855 = shalt.err (!%p852_p2)
}
   0xb   :  { %s856_s12 = scalar_lea.vmem %s35_s25, 128  ;;  %p861_p4 = scmp.lt.s32.totalorder %s35_s25, %s35_s25 }
   0xc   :  { %p857_p3 = scmp.ne.s32.totalorder %s35_s25, %s856_s12  ;;  %p862_p5 = scmp.lt.s32.totalorder %s856_s12, %s856_s12 }
   0xe   :  { %p863_p6 = por %p862_p5, %p861_p4 }
  0x10   :  { %p864_p7 = pnand %p863_p6, %p857_p3 }
  0x12   :  { %867 = shalt.err (!%p864_p7)
}
  0x13   :  { %s956_s13 = smov 64   ;;  %s957_s14 = smov 4  }
  0x14   :  { %40 = dma.hbm_to_vmem [thread:$0]  %s1352_s1, 128, %s35_s25, [#allocation7], %s956_s13, %s956_s13, %s957_s14  }
  0x15   :  { %s868_s19 = scalar_lea.hbm %s1351_s0, 128 }
  0x16   :  { %p869_p8 = scmp.ne.s32.totalorder %s1351_s0, %s868_s19  ;;  %p872_p9 = scmp.lt.u32.totalorder %s868_s19, %s1351_s0 }
  0x18   :  { %p874_p10 = pnand %p872_p9, %p869_p8 }
  0x1a   :  { %877 = shalt.err (!%p874_p10)
}
  0x1b   :  { %s878_s24 = scalar_lea.vmem %s1004_s27, 128  ;;  %p883_p12 = scmp.lt.s32.totalorder %s1004_s27, %s1004_s27 }
  0x1c   :  { %p879_p11 = scmp.ne.s32.totalorder %s1004_s27, %s878_s24  ;;  %p884_p13 = scmp.lt.s32.totalorder %s878_s24, %s878_s24 }
  0x1e   :  { %p885_p0 = por %p884_p13, %p883_p12 }
  0x20   :  { %p886_p1 = pnand %p885_p0, %p879_p11 }
  0x22   :  { %889 = shalt.err (!%p886_p1)
}
  0x23   :  { %28 = dma.hbm_to_vmem [thread:$0]  %s1351_s0, 128, %s1004_s27, [#allocation3], %s956_s13, %s956_s13, %s957_s14  }
  0x24   :  { %s958_s26 = smov [#allocation8]   ;;  %s61_s8 = sshll.u32 %s1355_s4, 4  ;;  %s62_s8 = int_to_ptr.vmem [resolvable:$true] %s61_s8 }
  0x25   :  { %s48_s28 = sshll.u32 %s958_s26, 4  ;;  %s890_s11 = scalar_lea.hbm %s1354_s3, 384  ;;  %s49_s28 = int_to_ptr.vmem [resolvable:$true] %s48_s28 }
  0x26   :  { %p891_p2 = scmp.ne.s32.totalorder %s1354_s3, %s890_s11  ;;  %p894_p3 = scmp.lt.u32.totalorder %s890_s11, %s1354_s3 }
  0x28   :  { %p896_p4 = pnand %p894_p3, %p891_p2 }
  0x2a   :  { %899 = shalt.err (!%p896_p4)
}
  0x2b   :  { %s900_s0 = scalar_lea.vmem %s49_s28, 384  ;;  %p905_p6 = scmp.lt.s32.totalorder %s49_s28, %s49_s28 }
  0x2c   :  { %p901_p5 = scmp.ne.s32.totalorder %s49_s28, %s900_s0  ;;  %p906_p7 = scmp.lt.s32.totalorder %s900_s0, %s900_s0 }
  0x2e   :  { %p907_p8 = por %p906_p7, %p905_p6 }
  0x30   :  { %p908_p9 = pnand %p907_p8, %p901_p5 }
  0x32   :  { %911 = shalt.err (!%p908_p9)
}
  0x33   :  { %s959_s4 = smov 128   ;;  %s960_s27 = smov 8  }
  0x34   :  { %54 = dma.hbm_to_vmem [thread:$0]  %s1354_s3, 384, %s49_s28, [#allocation7], %s959_s4, %s959_s4, %s960_s27  }
  0x35   :  { %s912_s18 = scalar_lea.vmem %s62_s8, 16  ;;  %p917_p11 = scmp.lt.s32.totalorder %s62_s8, %s62_s8 }
  0x36   :  { %p913_p10 = scmp.ne.s32.totalorder %s62_s8, %s912_s18  ;;  %p918_p12 = scmp.lt.s32.totalorder %s912_s18, %s912_s18 }
  0x38   :  { %p919_p13 = por %p918_p12, %p917_p11 }
  0x3a   :  { %p920_p0 = pnand %p919_p13, %p913_p10 }
  0x3c   :  { %923 = shalt.err (!%p920_p0)
}
  0x3d   :  { %s961_s19 = smov [#allocation9]  }
  0x3e   :  { %64 = dma.vmem_to_smem %s62_s8, 16, %s961_s19, [#allocation5]  }
  0x3f   :  { %946 = dma.done.wait [#allocation3], 128  }
  0x40   :  { %947 = vsyncadd [#allocation3], 4294967168 }
  0x41   :  { %948 = dma.done.wait [#allocation7], 512  }
  0x42   :  { %949 = vsyncadd [#allocation7], 4294966784 }
  0x43   :  { %950 = dma.done.wait [#allocation5], 16  }
  0x44   :  { %951 = vsyncadd [#allocation5], 4294967280 }
  0x45   :  { %77 = sfence }
  0x46   :  { %v98_v0 = vlaneseq  ;;  %v1052_v3 = vld [vmem:[#allocation8] sm:$0xff]  ;;  %v1057_v4 = vld [vmem:[%s1353_s2] sm:$0x3]  ;;  %v1068_v7 = vld [vmem:[%s1353_s2 + $0x4] sm:$0x3]  ;;  %vm205_vm0 = vcmask 123904  }
  0x47   :  { %v1073_v8 = vld [vmem:[%s1353_s2 + $0x2] sm:$0x3]  ;;  %v1078_v9 = vld [vmem:[%s1353_s2 + $0x6] sm:$0x3]  ;;  %v1089_v15 = vld [vmem:[%s1353_s2 + $0x8] sm:$0x3] }
  0x48   :  { %v1050_v1 = vshrl.u32 %v98_v0, 7  ;;  %v256_v2 = vand.u32 127, %v98_v0  ;;  %v1094_v16 = vld [vmem:[%s1353_s2 + $0xa] sm:$0x3]  ;;  %v1105_v23 = vld [vmem:[%s1353_s2 + $0xc] sm:$0x3] }
  0x49   :  { %v1110_v24 = vld [vmem:[%s1353_s2 + $0xe] sm:$0x3]  ;;  %s785_s2 = sld [smem:[#allocation9 + $0x2]]  ;;  %vm137_vm1 = vcmask 1041409   ;;  %vm290_vm2 = vcmask 1042434   ;;  %vm292_vm3 = vcmask 1043459  }
  0x4a   :  { %v1060_v5 = vsub.s32 0, %v1050_v1  ;;  %v1063_v6 = vsub.s32 %v256_v2, %v1050_v1  ;;  %vm294_vm4 = vcmask 1044484   ;;  %vm296_vm5 = vcmask 1045509   ;;  %s786_s16 = sld [smem:[#allocation9 + $0x3]]  ;;  %s93_s17 = sld [smem:[#allocation9]] }
  0x4b   :  { %vm298_vm6 = vcmask 1046534   ;;  %vm300_vm7 = vcmask 1047559   ;;  %vm303_vm8 = vcmask 15360   ;;  %vm104_vm9 = vcmask 158720   ;;  %s963_s0 = smov [#allocation10]  }
  0x4c   :  { %v196_v10 = vrot.slane %v1052_v3, %v1060_v5  ;;  %vm140_vm10 = vcmask 156672   ;;  %vm640_vm11 = vcmask 60416   ;;  %vm689_vm12 = vcmask 25600   ;;  %s767_s4 = sshll.u32 %s963_s0, 4  ;;  %s768_s4 = int_to_ptr.vmem [resolvable:$true] %s767_s4 }
  0x4d   :  { %s924_s27 = scalar_lea.vmem %s768_s4, 32  ;;  %p929_p2 = scmp.lt.s32.totalorder %s768_s4, %s768_s4 }
  0x4e   :  { %v197_v11 = vmul.f32 %v196_v10, %v1057_v4  ;;  %v199_v12 = vmul.f32 %v196_v10, %v1068_v7  ;;  %v198_v13 = vmul.f32 %v196_v10, %v1073_v8  ;;  %v200_v14 = vmul.f32 %v196_v10, %v1078_v9  ;;  %p925_p1 = scmp.ne.s32.totalorder %s768_s4, %s924_s27  ;;  %p930_p3 = scmp.lt.s32.totalorder %s924_s27, %s924_s27 }
  0x4f   :  { %v201_v21 = vmul.f32 %v196_v10, %v1089_v15  ;;  %v202_v22 = vmul.f32 %v196_v10, %v1094_v16  ;;  %v203_v27 = vmul.f32 %v196_v10, %v1105_v23  ;;  %v204_v28 = vmul.f32 %v196_v10, %v1110_v24 }
  0x50   :  { %v206_v17 = vsel %vm205_vm0, %v197_v11, 0.0  ;;  %v212_v18 = vsel %vm205_vm0, %v199_v12, 0.0  ;;  %v209_v19 = vsel %vm205_vm0, %v198_v13, 0.0  ;;  %v215_v20 = vsel %vm205_vm0, %v200_v14, 0.0  ;;  %p931_p4 = por %p930_p3, %p929_p2 }
  0x51   :  { %207 = vadd.xlane.f32.xlu0 %v206_v17  ;;  %213 = vadd.xlane.f32.xlu1 %v212_v18  ;;  %v218_v25 = vsel %vm205_vm0, %v201_v21, 0.0  ;;  %v221_v26 = vsel %vm205_vm0, %v202_v22, 0.0  ;;  %v224_v29 = vsel %vm205_vm0, %v203_v27, 0.0  ;;  %v227_v30 = vsel %vm205_vm0, %v204_v28, 0.0 }
  0x52   :  { %v230_v31 = vstv %s785_s2  ;;  %p932_p5 = pnand %p931_p4, %p925_p1 }
  0x55   :  { %210 = vadd.xlane.f32.xlu0 %v209_v19  ;;  %216 = vadd.xlane.f32.xlu1 %v215_v20 }
  0x59   :  { %219 = vadd.xlane.f32.xlu0 %v218_v25  ;;  %222 = vadd.xlane.f32.xlu1 %v221_v26 }
  0x5d   :  { %225 = vadd.xlane.f32.xlu0 %v224_v29  ;;  %228 = vadd.xlane.f32.xlu1 %v227_v30 }
  0xde   :  { %v208_v32 = vpop.xlane.xlu0 %207  ;;  %v214_v33 = vpop.xlane.xlu1 %213 }
  0xdf   :  { %v1118_v34 = vadd.f32 %v230_v31, %v208_v32  ;;  %v1120_v35 = vadd.f32 %v230_v31, %v214_v33 }
  0xe1   :  { %v239_v36 = vmax.f32 %v1118_v34, 0.0  ;;  %v721_v41 = vrot.slane %v1118_v34, %v1063_v6  ;;  %v241_v42 = vmax.f32 %v1120_v35, 0.0  ;;  %v729_v48 = vrot.slane %v1120_v35, %v1063_v6 }
  0xe2   :  { %v211_v37 = vpop.xlane.xlu0 %210  ;;  %v217_v38 = vpop.xlane.xlu1 %216  ;;  %v1218_v34 = vsub.s32 6, %v1050_v1 }
  0xe3   :  { %v1123_v39 = vadd.f32 %v230_v31, %v211_v37  ;;  %v1125_v40 = vadd.f32 %v230_v31, %v217_v38  ;;  %v260_v47 = vrot.slane %v239_v36, %v1063_v6  ;;  %v268_v55 = vrot.slane %v241_v42, %v1063_v6 }
  0xe4   :  { %v962_v38 = vmov 0  }
  0xe5   :  { %v240_v43 = vmax.f32 %v1123_v39, 0.0  ;;  %v725_v44 = vrot.slane %v1123_v39, %v1063_v6  ;;  %v242_v45 = vmax.f32 %v1125_v40, 0.0  ;;  %v733_v46 = vrot.slane %v1125_v40, %v1063_v6  ;;  %803 = vset.pattern.permute.xlu0 %v962_v38  ;;  %802 = vset.pattern.permute.xlu1 %v962_v38 }
  0xe6   :  { %v220_v49 = vpop.xlane.xlu0 %219  ;;  %v223_v50 = vpop.xlane.xlu1 %222 }
  0xe7   :  { %v264_v51 = vrot.slane %v240_v43, %v1063_v6  ;;  %v750_v52 = vsel %vm137_vm1, %v725_v44, %v721_v41  ;;  %v272_v53 = vrot.slane %v242_v45, %v1063_v6  ;;  %v1148_v54 = vadd.f32 %v230_v31, %v220_v49 }
  0xe8   :  { %v751_v56 = vsel %vm290_vm2, %v729_v48, %v750_v52  ;;  %v1154_v57 = vadd.f32 %v230_v31, %v223_v50  ;;  %v1190_v41 = vsub.s32 1, %v1050_v1  ;;  %v1193_v44 = vsub.s32 2, %v1050_v1 }
  0xe9   :  { %v289_v58 = vsel %vm137_vm1, %v264_v51, %v260_v47  ;;  %v752_v59 = vsel %vm292_vm3, %v733_v46, %v751_v56  ;;  %v243_v60 = vmax.f32 %v1148_v54, 0.0  ;;  %v737_v61 = vrot.slane %v1148_v54, %v1063_v6 }
  0xea   :  { %v291_v62 = vsel %vm290_vm2, %v268_v55, %v289_v58  ;;  %v244_v63 = vmax.f32 %v1154_v57, 0.0  ;;  %v741_v0 = vrot.slane %v1154_v57, %v1063_v6  ;;  %v226_v2 = vpop.xlane.xlu0 %225  ;;  %v229_v10 = vpop.xlane.xlu1 %228  ;;  %v1196_v46 = vsub.s32 3, %v1050_v1 }
  0xeb   :  { %v293_v11 = vsel %vm292_vm3, %v272_v53, %v291_v62  ;;  %v276_v12 = vrot.slane %v243_v60, %v1063_v6  ;;  %v753_v13 = vsel %vm294_vm4, %v737_v61, %v752_v59  ;;  %v237_v14 = vadd.f32 %v230_v31, %v226_v2 }
  0xec   :  { %v280_v17 = vrot.slane %v244_v63, %v1063_v6  ;;  %v1169_v18 = vadd.f32 %v230_v31, %v229_v10  ;;  %v754_v22 = vsel %vm296_vm5, %v741_v0, %v753_v13  ;;  %v1202_v51 = vsub.s32 4, %v1050_v1 }
  0xed   :  { %v245_v19 = vmax.f32 %v237_v14, 0.0  ;;  %v745_v20 = vrot.slane %v237_v14, %v1063_v6  ;;  %v295_v21 = vsel %vm294_vm4, %v276_v12, %v293_v11  ;;  %v1212_v58 = vsub.s32 5, %v1050_v1 }
  0xee   :  { %v246_v25 = vmax.f32 %v1169_v18, 0.0  ;;  %v749_v26 = vrot.slane %v1169_v18, %v1063_v6  ;;  %v297_v30 = vsel %vm296_vm5, %v280_v17, %v295_v21 }
  0xef   :  { %v284_v27 = vrot.slane %v245_v19, %v1063_v6  ;;  %v755_v28 = vsel %vm298_vm6, %v745_v20, %v754_v22 }
  0xf0   :  { %v288_v29 = vrot.slane %v246_v25, %v1063_v6  ;;  %v756_v31 = vsel %vm300_vm7, %v749_v26, %v755_v28 }
  0xf1   :  { %v299_v32 = vsel %vm298_vm6, %v284_v27, %v297_v30  ;;  %758 = vst.msk [vmem:[%s1358_s7] sm:$0xff] %vm303_vm8, %v756_v31  ;;  %s784_s7 = sld [smem:[#allocation9 + $0x1]] }
  0xf2   :  { %v301_v33 = vsel %vm300_vm7, %v288_v29, %v299_v32 }
  0xf3   :  { %v304_v37 = vsel %vm303_vm8, %v301_v33, -inf }
  0xf4   :  { %305 = vmax.xlane.f32.xlu0 %v304_v37 }
 0x181   :  { %v306_v47 = vpop.xlane.xlu0 %305 }
 0x182   :  { %v311_v48 = vrot.slane %v306_v47, %v1060_v5  ;;  %v315_v49 = vrot.slane %v306_v47, %v1190_v41  ;;  %v319_v50 = vrot.slane %v306_v47, %v1193_v44  ;;  %v323_v52 = vrot.slane %v306_v47, %v1196_v46 }
 0x183   :  { %v327_v59 = vrot.slane %v306_v47, %v1202_v51 }
 0x184   :  { %v348_v53 = vsub.f32 %v239_v36, %v311_v48  ;;  %v349_v54 = vsub.f32 %v240_v43, %v315_v49  ;;  %v350_v55 = vsub.f32 %v241_v42, %v319_v50  ;;  %v351_v61 = vsub.f32 %v242_v45, %v323_v52 }
 0x185   :  { %v331_v36 = vrot.slane %v306_v47, %v1212_v58  ;;  %v352_v35 = vsub.f32 %v243_v60, %v327_v59  ;;  %v1222_v42 = vsub.s32 7, %v1050_v1  ;;  %v335_v43 = vrot.slane %v306_v47, %v1218_v34 }
 0x186   :  { %v356_v56 = vmul.f32 1.442695, %v348_v53  ;;  %v358_v57 = vmul.f32 1.442695, %v349_v54  ;;  %v360_v62 = vmul.f32 1.442695, %v350_v55 }
 0x187   :  { %v362_v39 = vmul.f32 1.442695, %v351_v61  ;;  %v353_v0 = vsub.f32 %v244_v63, %v331_v36  ;;  %v364_v40 = vmul.f32 1.442695, %v352_v35  ;;  %v339_v10 = vrot.slane %v306_v47, %v1222_v42 }
 0x188   :  { %804 = vpow2.f32 %v356_v56  ;;  %v354_v11 = vsub.f32 %v245_v19, %v335_v43 }
 0x189   :  { %806 = vpow2.f32 %v358_v57  ;;  %v366_v12 = vmul.f32 1.442695, %v353_v0  ;;  %v355_v13 = vsub.f32 %v246_v25, %v339_v10 }
 0x18a   :  { %808 = vpow2.f32 %v360_v62  ;;  %v368_v1 = vmul.f32 1.442695, %v354_v11 }
 0x18b   :  { %810 = vpow2.f32 %v362_v39  ;;  %v370_v63 = vmul.f32 1.442695, %v355_v13  ;;  %v1259_v13 = vld [vmem:[#allocation6] sm:$0xf] }
 0x18c   :  { %812 = vpow2.f32 %v364_v40  ;;  %v1254_v40 = vld [vmem:[#allocation6 + $0x4] sm:$0xf] }
 0x18d   :  { %814 = vpow2.f32 %v366_v12  ;;  %v121_v10 = vsel %vm104_vm9, %v1254_v40, 0.0 }
 0x18e   :  { %816 = vpow2.f32 %v368_v1  ;;  %v122_v1 = vrot.slane %v121_v10, 4 }
 0x18f   :  { %818 = vpow2.f32 %v370_v63 }
 0x190   :  { %v123_v63 = vadd.f32 %v122_v1, %v121_v10 }
 0x192   :  { %v805_v45 = vpop.eup %804 }
 0x193   :  { %v807_v2 = vpop.eup %806  ;;  %381 = vperm.xlu1 %802, %v805_v45  }
 0x194   :  { %384 = vperm.xlu0 %803, %v807_v2   ;;  %v809_v60 = vpop.eup %808 }
 0x195   :  { %v811_v14 = vpop.eup %810 }
 0x196   :  { %v813_v17 = vpop.eup %812 }
 0x197   :  { %387 = vperm.xlu1 %802, %v809_v60   ;;  %v1226_v18 = vpop.eup %814 }
 0x198   :  { %v1229_v19 = vpop.eup %816 }
 0x199   :  { %v1232_v20 = vpop.eup %818 }
 0x19b   :  { %390 = vperm.xlu1 %802, %v811_v14  }
 0x19f   :  { %393 = vperm.xlu1 %802, %v813_v17  }
 0x1a3   :  { %396 = vperm.xlu1 %802, %v1226_v18  }
 0x1a7   :  { %399 = vperm.xlu1 %802, %v1229_v19  }
 0x1ab   :  { %402 = vperm.xlu1 %802, %v1232_v20  }
 0x212   :  { %v382_v21 = vpop.permute.xlu1 %381 }
 0x213   :  { %v385_v27 = vpop.permute.xlu0 %384  ;;  %v407_v30 = vrot.slane %v382_v21, %v1063_v6 }
 0x214   :  { %v411_v29 = vrot.slane %v385_v27, %v1063_v6 }
 0x216   :  { %v388_v22 = vpop.permute.xlu1 %387  ;;  %v436_v38 = vsel %vm137_vm1, %v411_v29, %v407_v30 }
 0x217   :  { %v415_v31 = vrot.slane %v388_v22, %v1063_v6 }
 0x219   :  { %v437_v48 = vsel %vm290_vm2, %v415_v31, %v436_v38 }
 0x21a   :  { %v391_v25 = vpop.permute.xlu1 %390 }
 0x21b   :  { %v419_v32 = vrot.slane %v391_v25, %v1063_v6 }
 0x21d   :  { %v438_v50 = vsel %vm292_vm3, %v419_v32, %v437_v48  ;;  %v1265_v32 = vld [vmem:[#allocation8 + $0x10] sm:$0xff] }
 0x21e   :  { %v394_v26 = vpop.permute.xlu1 %393 }
 0x21f   :  { %v423_v33 = vrot.slane %v394_v26, %v1063_v6  ;;  %v124_v26 = vrot.slane %v123_v63, 2 }
 0x221   :  { %v439_v52 = vsel %vm294_vm4, %v423_v33, %v438_v50 }
 0x222   :  { %v397_v28 = vpop.permute.xlu1 %396 }
 0x223   :  { %v427_v47 = vrot.slane %v397_v28, %v1063_v6  ;;  %v125_v28 = vadd.f32 %v124_v26, %v123_v63 }
 0x225   :  { %v440_v54 = vsel %vm296_vm5, %v427_v47, %v439_v52  ;;  %v126_v31 = vrot.slane %v125_v28, 1 }
 0x226   :  { %v400_v37 = vpop.permute.xlu1 %399 }
 0x227   :  { %v431_v49 = vrot.slane %v400_v37, %v1063_v6  ;;  %v127_v37 = vadd.f32 %v126_v31, %v125_v28  ;;  %v144_v31 = vstv %s784_s7 }
 0x229   :  { %v441_v56 = vsel %vm298_vm6, %v431_v49, %v440_v54 }
 0x22a   :  { %v403_v53 = vpop.permute.xlu1 %402 }
 0x22b   :  { %v435_v55 = vrot.slane %v403_v53, %v1063_v6 }
 0x22d   :  { %v442_v57 = vsel %vm300_vm7, %v435_v55, %v441_v56 }
 0x22e   :  { %v444_v59 = vsel %vm303_vm8, %v442_v57, 0.0 }
 0x22f   :  { %445 = vadd.xlane.f32.xlu1 %v444_v59 }
 0x2bc   :  { %v446_v61 = vpop.xlane.xlu1 %445 }
 0x2bd   :  { %820 = vrcp.f32 %v446_v61 }
 0x2c7   :  { %v821_v62 = vpop.eup %820 }
 0x2c8   :  { %v452_v36 = vrot.slane %v821_v62, %v1060_v5  ;;  %v456_v39 = vrot.slane %v821_v62, %v1190_v41  ;;  %v460_v0 = vrot.slane %v821_v62, %v1193_v44  ;;  %v464_v12 = vrot.slane %v821_v62, %v1196_v46 }
 0x2c9   :  { %v468_v22 = vrot.slane %v821_v62, %v1202_v51  ;;  %v472_v29 = vrot.slane %v821_v62, %v1212_v58  ;;  %v476_v47 = vrot.slane %v821_v62, %v1218_v34  ;;  %v480_v53 = vrot.slane %v821_v62, %v1222_v42 }
 0x2ca   :  { %v489_v35 = vmul.f32 %v805_v45, %v452_v36  ;;  %v490_v43 = vmul.f32 %v807_v2, %v456_v39  ;;  %v491_v11 = vmul.f32 %v809_v60, %v460_v0  ;;  %v114_v45 = vsel %vm104_vm9, %v1259_v13, 0.0 }
 0x2cb   :  { %v115_v2 = vrot.slane %v114_v45, 4  ;;  %v492_v21 = vmul.f32 %v811_v14, %v464_v12  ;;  %v493_v60 = vmul.f32 %v813_v17, %v468_v22  ;;  %v131_v14 = vrot.slane %v1265_v32, %v1190_v41 }
 0x2cc   :  { %499 = vperm.xlu0 %803, %v489_v35   ;;  %v494_v38 = vmul.f32 %v1226_v18, %v472_v29  ;;  %v495_v52 = vmul.f32 %v1229_v19, %v476_v47  ;;  %v496_v56 = vmul.f32 %v1232_v20, %v480_v53 }
 0x2cd   :  { %v116_v25 = vadd.f32 %v115_v2, %v114_v45  ;;  %v133_v49 = vmul.f32 %v131_v14, %v127_v37 }
 0x2cf   :  { %v117_v27 = vrot.slane %v116_v25, 2  ;;  %v136_v50 = vrot.slane %v133_v49, 7 }
 0x2d0   :  { %504 = vperm.xlu0 %803, %v490_v43  }
 0x2d1   :  { %v118_v30 = vadd.f32 %v117_v27, %v116_v25 }
 0x2d3   :  { %v119_v33 = vrot.slane %v118_v30, 1 }
 0x2d4   :  { %509 = vperm.xlu0 %803, %v491_v11  }
 0x2d5   :  { %v120_v48 = vadd.f32 %v119_v33, %v118_v30  ;;  %v150_v33 = vrot.slane %v1052_v3, %v1193_v44 }
 0x2d7   :  { %v132_v17 = vmul.f32 %v131_v14, %v120_v48  ;;  %v155_v14 = vrot.slane %v1052_v3, %v1212_v58  ;;  %v182_v48 = vrot.slane %v1052_v3, %v1222_v42 }
 0x2d8   :  { %514 = vperm.xlu0 %803, %v492_v21  }
 0x2d9   :  { %v138_v54 = vsel %vm137_vm1, %v136_v50, %v132_v17 }
 0x2da   :  { %v141_v55 = vsel %vm140_vm10, %v138_v54, 0.0  ;;  %v171_v54 = vrot.slane %v1052_v3, %v1218_v34 }
 0x2db   :  { %142 = vadd.xlane.f32.xlu1 %v141_v55 }
 0x2dc   :  { %519 = vperm.xlu0 %803, %v493_v60  }
 0x2e0   :  { %524 = vperm.xlu0 %803, %v494_v38  }
 0x2e4   :  { %529 = vperm.xlu0 %803, %v495_v52   ;;  %v166_v52 = vrot.slane %v1052_v3, %v1196_v46 }
 0x2e8   :  { %534 = vperm.xlu0 %803, %v496_v56  }
 0x34b   :  { %v500_v18 = vpop.permute.xlu0 %499 }
 0x34c   :  { %v537_v35 = vmul.f32 %v500_v18, %v1057_v4 }
 0x34e   :  { %v545_v0 = vsel %vm205_vm0, %v537_v35, 0.0 }
 0x34f   :  { %v505_v57 = vpop.permute.xlu0 %504 }
 0x350   :  { %v538_v36 = vmul.f32 %v505_v57, %v1073_v8 }
 0x352   :  { %v546_v62 = vsel %vm205_vm0, %v538_v36, 0.0 }
 0x353   :  { %v510_v59 = vpop.permute.xlu0 %509  ;;  %v547_v11 = vadd.f32 %v546_v62, %v545_v0 }
 0x354   :  { %v539_v19 = vmul.f32 %v510_v59, %v1068_v7 }
 0x356   :  { %v548_v20 = vsel %vm205_vm0, %v539_v19, 0.0 }
 0x357   :  { %v515_v61 = vpop.permute.xlu0 %514  ;;  %v549_v4 = vadd.f32 %v548_v20, %v547_v11 }
 0x358   :  { %v540_v43 = vmul.f32 %v515_v61, %v1078_v9 }
 0x35a   :  { %v550_v1 = vsel %vm205_vm0, %v540_v43, 0.0  ;;  %v91_v43 = vld [vmem:[#allocation8 + $0x8] sm:$0xff] }
 0x35b   :  { %v520_v39 = vpop.permute.xlu0 %519  ;;  %v551_v45 = vadd.f32 %v550_v1, %v549_v4  ;;  %v620_v0 = vrot.slane %v91_v43, %v1218_v34  ;;  %v606_v34 = vrot.slane %v91_v43, %v1212_v58 }
 0x35c   :  { %v541_v10 = vmul.f32 %v520_v39, %v1089_v15 }
 0x35e   :  { %v552_v7 = vsel %vm205_vm0, %v541_v10, 0.0 }
 0x35f   :  { %v525_v12 = vpop.permute.xlu0 %524  ;;  %v553_v21 = vadd.f32 %v552_v7, %v551_v45  ;;  %v579_v7 = vrot.slane %v91_v43, %v1196_v46  ;;  %v601_v45 = vrot.slane %v91_v43, %v1193_v44 }
 0x360   :  { %v542_v8 = vmul.f32 %v525_v12, %v1094_v16  ;;  %v563_v16 = vrot.slane %v1052_v3, %v1190_v41  ;;  %v568_v12 = vstv %s786_s16 }
 0x362   :  { %v554_v63 = vsel %vm205_vm0, %v542_v8, 0.0  ;;  %v574_v8 = vrot.slane %v91_v43, %v1060_v5 }
 0x363   :  { %v530_v2 = vpop.permute.xlu0 %529  ;;  %v555_v25 = vadd.f32 %v554_v63, %v553_v21 }
 0x364   :  { %v543_v9 = vmul.f32 %v530_v2, %v1105_v23 }
 0x366   :  { %v556_v22 = vsel %vm205_vm0, %v543_v9, 0.0 }
 0x367   :  { %v535_v15 = vpop.permute.xlu0 %534  ;;  %v557_v27 = vadd.f32 %v556_v22, %v555_v25  ;;  %v590_v25 = vrot.slane %v91_v43, %v1190_v41 }
 0x368   :  { %v544_v26 = vmul.f32 %v535_v15, %v1110_v24  ;;  %v143_v23 = vpop.xlane.xlu1 %142  ;;  %v177_v24 = vrot.slane %v1052_v3, %v1202_v51 }
 0x369   :  { %v145_v37 = vadd.f32 %v144_v31, %v143_v23 }
 0x36a   :  { %v558_v28 = vsel %vm205_vm0, %v544_v26, 0.0  ;;  %v595_v26 = vrot.slane %v91_v43, %v1202_v51  ;;  %v637_v51 = vrot.slane %v1265_v32, %v1196_v46 }
 0x36b   :  { %v559_v60 = vadd.f32 %v558_v28, %v557_v27  ;;  %v146_v38 = vmax.f32 %v145_v37, 0.0 }
 0x36d   :  { %v564_v29 = vmul.f32 %v563_v16, %v559_v60  ;;  %v151_v47 = vmul.f32 %v150_v33, %v146_v38  ;;  %v178_v49 = vmul.f32 %v177_v24, %v146_v38  ;;  %v167_v55 = vmul.f32 %v166_v52, %v146_v38  ;;  %v78_v38 = vld [vmem:[#allocation2] sm:$0xf] }
 0x36e   :  { %v628_v24 = vrot.slane %v91_v43, %v1222_v42  ;;  %v650_v42 = vrot.slane %v1265_v32, %v1193_v44  ;;  %v101_v44 = vrot.slane %v1265_v32, %v1060_v5 }
 0x36f   :  { %v565_v30 = vsel %vm205_vm0, %v564_v29, 0.0  ;;  %v156_v17 = vadd.f32 %v155_v14, %v151_v47  ;;  %v183_v53 = vadd.f32 %v182_v48, %v178_v49  ;;  %v172_v18 = vadd.f32 %v171_v54, %v167_v55 }
 0x370   :  { %566 = vadd.xlane.f32.xlu0 %v565_v30  ;;  %v638_v49 = vmul.f32 %v637_v51, %v78_v38  ;;  %v103_v43 = vmul.f32 %v101_v44, %v1254_v40  ;;  %v111_v40 = vstv %s93_s17 }
 0x371   :  { %v788_v50 = vmul.f32 -1.442695, %v156_v17  ;;  %v789_v56 = vmul.f32 -1.442695, %v183_v53  ;;  %v79_v17 = vld [vmem:[#allocation2 + $0x4] sm:$0xf] }
 0x372   :  { %v641_v52 = vsel %vm640_vm11, %v638_v49, 0.0  ;;  %v639_v53 = vmul.f32 %v637_v51, %v79_v17 }
 0x373   :  { %822 = vpow2.f32 %v788_v50 }
 0x374   :  { %824 = vpow2.f32 %v789_v56  ;;  %v644_v54 = vsel %vm640_vm11, %v639_v53, 0.0 }
 0x375   :  { %826 = vtanh.f32 %v172_v18 }
 0x37d   :  { %v823_v57 = vpop.eup %822 }
 0x37e   :  { %v160_v59 = vadd.f32 1.0, %v823_v57  ;;  %v825_v61 = vpop.eup %824 }
 0x37f   :  { %v187_v36 = vadd.f32 1.0, %v825_v61  ;;  %v827_v35 = vpop.eup %826 }
 0x380   :  { %828 = vrcp.f32 %v160_v59 }
 0x381   :  { %830 = vrcp.f32 %v187_v36 }
 0x38a   :  { %v829_v19 = vpop.eup %828 }
 0x38b   :  { %v190_v39 = vmul.f32 %v829_v19, %v827_v35  ;;  %v831_v62 = vpop.eup %830 }
 0x38d   :  { %832 = vtanh.f32 %v190_v39 }
 0x397   :  { %v833_v3 = vpop.eup %832 }
 0x398   :  { %v192_v20 = vmul.f32 %v833_v3, %v831_v62 }
 0x39a   :  { %v621_v10 = vmul.f32 %v620_v0, %v192_v20  ;;  %v108_v0 = vsel %vm104_vm9, %v103_v43, 0.0 }
 0x39c   :  { %v622_v11 = vsel %vm205_vm0, %v621_v10, 0.0 }
 0x39d   :  { %623 = vadd.xlane.f32.xlu1 %v622_v11 }
 0x3fd   :  { %v567_v1 = vpop.xlane.xlu0 %566 }
 0x3fe   :  { %v569_v4 = vadd.f32 %v568_v12, %v567_v1 }
 0x400   :  { %v570_v2 = vmax.f32 %v569_v4, 0.0 }
 0x402   :  { %v575_v63 = vmul.f32 %v574_v8, %v570_v2  ;;  %v602_v21 = vmul.f32 %v601_v45, %v570_v2  ;;  %v591_v27 = vmul.f32 %v590_v25, %v570_v2 }
 0x404   :  { %v580_v9 = vadd.f32 %v579_v7, %v575_v63  ;;  %v607_v15 = vadd.f32 %v606_v34, %v602_v21  ;;  %v596_v28 = vadd.f32 %v595_v26, %v591_v27 }
 0x406   :  { %v790_v22 = vmul.f32 -1.442695, %v580_v9  ;;  %v791_v16 = vmul.f32 -1.442695, %v607_v15 }
 0x408   :  { %834 = vpow2.f32 %v790_v22 }
 0x409   :  { %836 = vpow2.f32 %v791_v16 }
 0x40a   :  { %838 = vtanh.f32 %v596_v28 }
 0x412   :  { %v835_v60 = vpop.eup %834 }
 0x413   :  { %v584_v29 = vadd.f32 1.0, %v835_v60  ;;  %v837_v30 = vpop.eup %836 }
 0x414   :  { %v611_v31 = vadd.f32 1.0, %v837_v30  ;;  %v839_v58 = vpop.eup %838 }
 0x415   :  { %840 = vrcp.f32 %v584_v29 }
 0x416   :  { %842 = vrcp.f32 %v611_v31 }
 0x41f   :  { %v841_v23 = vpop.eup %840 }
 0x420   :  { %v614_v33 = vmul.f32 %v841_v23, %v839_v58  ;;  %v843_v37 = vpop.eup %842 }
 0x422   :  { %844 = vtanh.f32 %v614_v33 }
 0x42a   :  { %v624_v55 = vpop.xlane.xlu1 %623 }
 0x42c   :  { %v845_v14 = vpop.eup %844 }
 0x42d   :  { %v616_v47 = vmul.f32 %v845_v14, %v843_v37 }
 0x42f   :  { %v629_v48 = vmul.f32 %v628_v24, %v616_v47 }
 0x431   :  { %v630_v50 = vsel %vm205_vm0, %v629_v48, 0.0 }
 0x432   :  { %631 = vadd.xlane.f32.xlu1 %v630_v50 }
 0x436   :  { %642 = vadd.xlane.f32.xlu1 %v641_v52 }
 0x43a   :  { %645 = vadd.xlane.f32.xlu1 %v644_v54 }
 0x4bf   :  { %v632_v46 = vpop.xlane.xlu1 %631 }
 0x4c0   :  { %v633_v56 = vadd.f32 %v632_v46, %v624_v55 }
 0x4c2   :  { %v651_v18 = vadd.f32 %v650_v42, %v633_v56 }
 0x4c3   :  { %v643_v61 = vpop.xlane.xlu1 %642 }
 0x4c4   :  { %v663_v57 = vrot.slane %v651_v18, %v1190_v41  ;;  %v656_v59 = vrot.slane %v651_v18, %v1060_v5  ;;  %v102_v41 = vmul.f32 %v101_v44, %v1259_v13 }
 0x4c6   :  { %665 = vbcast.lane.b32.xlu0 %v663_v57, 256  ;;  %658 = vbcast.lane.b32.xlu1 %v656_v59, 256  ;;  %v105_v3 = vsel %vm104_vm9, %v102_v41, 0.0 }
 0x4c7   :  { %v646_v36 = vpop.xlane.xlu1 %645 }
 0x4e5   :  { %109 = vadd.xlane.f32.xlu0 %v108_v0 }
 0x538   :  { %v659_v35 = vpop.permute.xlu1 %658  ;;  %v666_v39 = vpop.permute.xlu0 %665 }
 0x539   :  { %v669_v19 = vmul.f32 %v659_v35, %v643_v61  ;;  %v670_v62 = vmul.f32 %v666_v39, %v646_v36 }
 0x53b   :  { %674 = vperm.xlu1 %802, %v669_v19  }
 0x53f   :  { %677 = vperm.xlu1 %802, %v670_v62  }
 0x563   :  { %106 = vadd.xlane.f32.xlu1 %v105_v3 }
 0x572   :  { %v110_v32 = vpop.xlane.xlu0 %109 }
 0x573   :  { %v113_v8 = vadd.f32 %v111_v40, %v110_v32 }
 0x575   :  { %v706_v4 = vrot.slane %v113_v8, %v1063_v6 }
 0x5ba   :  { %v675_v20 = vpop.permute.xlu1 %674 }
 0x5bb   :  { %v682_v11 = vrot.slane %v675_v20, %v1063_v6 }
 0x5be   :  { %v678_v10 = vpop.permute.xlu1 %677 }
 0x5bf   :  { %v686_v12 = vrot.slane %v678_v10, %v1063_v6 }
 0x5c1   :  { %v687_v1 = vsel %vm137_vm1, %v686_v12, %v682_v11 }
 0x5c2   :  { %v690_v5 = vsel %vm689_vm12, %v687_v1, 0.0 }
 0x5c3   :  { %691 = vadd.xlane.f32.xlu1 %v690_v5 }
 0x5f0   :  { %v107_v13 = vpop.xlane.xlu1 %106 }
 0x5f1   :  { %v112_v7 = vadd.f32 %v111_v40, %v107_v13 }
 0x5f3   :  { %v702_v45 = vrot.slane %v112_v7, %v1063_v6 }
 0x5f5   :  { %v707_v2 = vsel %vm137_vm1, %v706_v4, %v702_v45 }
 0x5f6   :  { %709 = vst.msk [vmem:[#allocation10] sm:$0x3] %vm689_vm12, %v707_v2 }
 0x5f7   :  { %935 = shalt.err (!%p932_p5)
}
 0x5f8   :  { %s936_s18 = scalar_lea.hbm %s1357_s6, 32 }
 0x5f9   :  { %p937_p6 = scmp.ne.s32.totalorder %s1357_s6, %s936_s18  ;;  %p940_p7 = scmp.lt.u32.totalorder %s936_s18, %s1357_s6 }
 0x5fb   :  { %p942_p8 = pnand %p940_p7, %p937_p6 }
 0x5fd   :  { %945 = shalt.err (!%p942_p8)
}
 0x5fe   :  { %770 = dma.vmem_to_hbm [thread:$0]  %s768_s4, 32, %s1357_s6, [#allocation4]   ;;  %vm695_vm13 = vcmask 1024  }
 0x5ff   :  { %s787_s24 = sld [smem:[#allocation9 + $0x4]] }
 0x605   :  { %v693_v6 = vstv %s787_s24 }
 0x650   :  { %v692_v63 = vpop.xlane.xlu1 %691 }
 0x651   :  { %v694_v34 = vadd.f32 %v693_v6, %v692_v63 }
 0x653   :  { %696 = vst.msk [vmem:[%s1356_s5] sm:$0x3] %vm695_vm13, %v694_v34 }
 0x654   :  { %952 = dma.done.wait [#allocation4], 32  }
 0x655   :  { %953 = vsyncadd [#allocation4], 4294967264 }
 0x656   :  { %780 = vsyncpa [#allocation3], 1 }
 0x657   :  { %781 = vsyncpa [#allocation7], 1 }
 0x658   :  { %782 = vsyncpa [#allocation4], 1 }
 0x659   :  { %783 = vsyncpa [#allocation5], 1 }

</bundles_post_ra>
